<compile_context>
chip_gen: v6e
topology: v6e:2x2x1
jax: 0.10.0
libtpu: 0.0.40
codegen_flags: <defaults>
</compile_context>

<pallas_src>
import functools

import jax
import jax.numpy as jnp
from jax.experimental import pallas as pl
from jax.experimental.pallas import tpu as pltpu


# ----------------------------- fused Pallas kernel ---------------------------

def gcn_fused_kernel(a_ref, x_ref,
                     w1_ref, b1_ref, w2_ref, b2_ref, w3_ref, b3_ref,
                     p_ref, wl_ref, bl_ref, y_ref,
                     probs_ref, loss_ref, *, num_graphs):
    # A_hat stays resident in VMEM (one bf16 (Np,Np) tile) for all three layers.
    a = a_ref[...]                       # bf16 (Np, Np)
    h = x_ref[...]                       # bf16 (Np, C)  C = 128-padded channels

    def gcn_layer(h_bf16, w_ref, b_ref, apply_relu):
        # relu?(A_hat @ (H @ W) + b), bf16 MXU operands, f32 accumulation.
        xw = jnp.dot(h_bf16, w_ref[...], preferred_element_type=jnp.float32)
        z = jnp.dot(a, xw.astype(jnp.bfloat16), preferred_element_type=jnp.float32)
        z = z + b_ref[...]               # (1, C) f32 bias broadcast over nodes
        if apply_relu:
            z = jnp.maximum(z, 0.0)
        return z

    h = gcn_layer(h, w1_ref, b1_ref, True).astype(jnp.bfloat16)
    h = gcn_layer(h, w2_ref, b2_ref, True).astype(jnp.bfloat16)
    h3 = gcn_layer(h, w3_ref, b3_ref, False)            # f32 (Np, C)

    # global mean pool as a dense matmul (P kept f32 for exact per-graph means).
    pooled = jnp.dot(p_ref[...], h3, preferred_element_type=jnp.float32)   # (Gp, C)

    # TODO(synk): reference calls F.dropout() with no arguments (source bug); identity.

    # final Linear -> lane-padded logits slab; only column 0 / rows < G are real.
    logits = jnp.dot(pooled.astype(jnp.bfloat16), wl_ref[...],
                     preferred_element_type=jnp.float32) + bl_ref[...]     # (Gp, C)

    # BCEWithLogitsLoss (mean over the G real graphs), numerically stable form.
    # (jnp.log(1+exp(-|x|)) kept instead of log1p for guaranteed Mosaic lowering;
    #  absolute error is bounded by ~6e-8 for f32.)
    y = y_ref[...]                                                         # (Gp, C)
    gp, c = logits.shape
    row_ids = jax.lax.broadcasted_iota(jnp.int32, (gp, c), 0)
    col_ids = jax.lax.broadcasted_iota(jnp.int32, (gp, c), 1)
    valid = jnp.logical_and(row_ids < num_graphs, col_ids == 0).astype(jnp.float32)

    per_elem = (jnp.maximum(logits, 0.0) - logits * y
                + jnp.log(1.0 + jnp.exp(-jnp.abs(logits))))
    # sublane-only reduction -> lane-dense (1, C) row; loss lives at [0, 0].
    loss_ref[...] = jnp.sum(per_elem * valid, axis=0, keepdims=True) * (1.0 / num_graphs)

    # sigmoid(logits) -> full-width lane-dense store; wrapper slices [:G, :1].
    probs_ref[...] = 1.0 / (1.0 + jnp.exp(-logits))


# ------------------------------ wrappers --------------------------------------

_VMEM = pl.BlockSpec(memory_space=pltpu.MemorySpace.VMEM)


def _round_up(x, m):
    return ((x + m - 1) // m) * m


def _pad2d(m, rows, cols, dtype):
    out = jnp.zeros((rows, cols), jnp.float32)
    out = out.at[:m.shape[0], :m.shape[1]].set(m.astype(jnp.float32))
    return out.astype(dtype)


def build_normalized_adj(edge_index, num_nodes):
    """A_hat = D^{-1/2} (A + I) D^{-1/2}  (GCNConv default gcn_norm).

    Duplicate (non-self-loop) edges accumulate; explicit self-loops in the input are
    replaced by exactly one unit self-loop per node (matches add_remaining_self_loops
    for unweighted graphs).
    """
    src = edge_index[0]
    dst = edge_index[1]
    off_diag = (src != dst).astype(jnp.float32)
    a = jnp.zeros((num_nodes, num_nodes), jnp.float32)
    a = a.at[dst, src].add(off_diag)                    # message flows source -> target
    a = a + jnp.eye(num_nodes, dtype=jnp.float32)       # unit self loops
    deg = jnp.sum(a, axis=1)
    d_inv_sqrt = jnp.where(deg > 0.0, 1.0 / jnp.sqrt(deg), 0.0)
    return d_inv_sqrt[:, None] * a * d_inv_sqrt[None, :]


def build_pool_matrix(batch, num_graphs, num_nodes):
    """Global mean pool as a dense matmul: P[g, n] = 1/|V_g| if batch[n]==g."""
    onehot = (batch[None, :] == jnp.arange(num_graphs)[:, None]).astype(jnp.float32)
    counts = jnp.sum(onehot, axis=1, keepdims=True)
    return onehot / jnp.maximum(counts, 1.0)


def gcn_forward(x, y, edge_index, batch, params, num_graphs):
    n = x.shape[0]
    n_pad = _round_up(n, 8)
    g_pad = _round_up(num_graphs, 8)
    c_pad = _round_up(max(params["w1"].shape[0], params["w1"].shape[1],
                          params["w2"].shape[1], params["w3"].shape[1],
                          params["w_lin"].shape[1]), 128)

    a_hat = build_normalized_adj(edge_index, n)              # f32 (n, n)
    pool = build_pool_matrix(batch, num_graphs, n)           # f32 (g, n)

    # Padded, lane-dense operands (bf16 for MXU operands, f32 for biases / P / y).
    a_p = _pad2d(a_hat, n_pad, n_pad, jnp.bfloat16)
    x_p = _pad2d(x, n_pad, c_pad, jnp.bfloat16)
    p_p = _pad2d(pool, g_pad, n_pad, jnp.float32)
    w1p = _pad2d(params["w1"], c_pad, c_pad, jnp.bfloat16)
    w2p = _pad2d(params["w2"], c_pad, c_pad, jnp.bfloat16)
    w3p = _pad2d(params["w3"], c_pad, c_pad, jnp.bfloat16)
    wlp = _pad2d(params["w_lin"], c_pad, c_pad, jnp.bfloat16)
    b1p = _pad2d(params["b1"], 1, c_pad, jnp.float32)
    b2p = _pad2d(params["b2"], 1, c_pad, jnp.float32)
    b3p = _pad2d(params["b3"], 1, c_pad, jnp.float32)
    blp = _pad2d(params["b_lin"], 1, c_pad, jnp.float32)
    y_p = jnp.zeros((g_pad, c_pad), jnp.float32).at[:num_graphs, 0].set(
        y.astype(jnp.float32))

    kernel = functools.partial(gcn_fused_kernel, num_graphs=num_graphs)
    probs_slab, loss_row = pl.pallas_call(
        kernel,
        out_shape=(jax.ShapeDtypeStruct((g_pad, c_pad), jnp.float32),
                   jax.ShapeDtypeStruct((1, c_pad), jnp.float32)),
        in_specs=[_VMEM] * 12,
        out_specs=(_VMEM, _VMEM),
    )(a_p, x_p, w1p, b1p, w2p, b2p, w3p, b3p, p_p, wlp, blp, y_p)

    probs = probs_slab[:num_graphs, :1]
    loss = loss_row[0, 0]
    return probs, loss


# ------------------------------ main ------------------------------------------

if __name__ == "__main__":
    n_features = 8
    hidden = 32          # hidden_channels
    c2 = hidden // 2     # 16
    c3 = hidden // 4     # 8
    num_nodes = 16
    num_graphs = 2

    key = jax.random.PRNGKey(0)
    keys = jax.random.split(key, 10)

    # Deterministic parameter init (shapes from the module __init__).
    def glorot(k, shape):
        fan_in, fan_out = shape
        s = jnp.sqrt(6.0 / (fan_in + fan_out))
        return jax.random.uniform(k, shape, jnp.float32, -s, s)

    params = {
        "w1": glorot(keys[0], (n_features, hidden)),
        "b1": jnp.zeros((1, hidden), jnp.float32),
        "w2": glorot(keys[1], (hidden, c2)),
        "b2": jnp.zeros((1, c2), jnp.float32),
        "w3": glorot(keys[2], (c2, c3)),
        "b3": jnp.zeros((1, c3), jnp.float32),
        "w_lin": glorot(keys[3], (c3, 1)),
        "b_lin": 0.01 * jnp.ones((1, 1), jnp.float32),
    }

    # Node features and graph structure: two graphs of 8 nodes each,
    # each graph is an undirected ring (bidirectional edges).
    x = jax.random.normal(keys[4], (num_nodes, n_features), jnp.float32)

    per_graph = num_nodes // num_graphs
    srcs, dsts = [], []
    for g in range(num_graphs):
        base = g * per_graph
        for i in range(per_graph):
            a_node = base + i
            b_node = base + (i + 1) % per_graph
            srcs += [a_node, b_node]
            dsts += [b_node, a_node]
    edge_index = jnp.array([srcs, dsts], dtype=jnp.int32)   # [2, E]

    batch = jnp.repeat(jnp.arange(num_graphs, dtype=jnp.int32), per_graph)  # [N]
    y = jnp.array([0.0, 1.0], dtype=jnp.float32)                            # [G]

    probs, loss = jax.jit(
        lambda xx, yy, ei, bb: gcn_forward(xx, yy, ei, bb, params, num_graphs)
    )(x, y, edge_index, batch)

    jax.block_until_ready((probs, loss))
    assert probs.shape == (num_graphs, 1)
    assert bool(jnp.all(jnp.isfinite(probs)))
    assert bool(jnp.isfinite(loss))
    print("KERNEL_OK")
</pallas_src>

<mosaic_0001>
module attributes {stable_mosaic.version = 11 : i64} {
  func.func private @main(%arg0: i32) attributes {dimension_semantics = [#tpu.dimension_semantics<core_parallel>], iteration_bounds = array<i64: 2>, tpu.core_type = #tpu.core_type<sc_scalar_subcore>, window_params = []} {
    return
  }
}

module attributes {stable_mosaic.version = 11 : i64} {
  func.func private @main(%arg0: i32) attributes {dimension_semantics = [#tpu.dimension_semantics<core_parallel>], iteration_bounds = array<i64: 2>, tpu.core_type = #tpu.core_type<sc_scalar_subcore>, window_params = []} {
    return
  }
}

module attributes {stable_mosaic.version = 11 : i64} {
  func.func @gcn_fused_kernel(%arg0: memref<16x16xbf16, #tpu.memory_space<vmem>>, %arg1: memref<16x128xbf16, #tpu.memory_space<vmem>>, %arg2: memref<128x128xbf16, #tpu.memory_space<vmem>>, %arg3: memref<1x128xf32, #tpu.memory_space<vmem>>, %arg4: memref<128x128xbf16, #tpu.memory_space<vmem>>, %arg5: memref<1x128xf32, #tpu.memory_space<vmem>>, %arg6: memref<128x128xbf16, #tpu.memory_space<vmem>>, %arg7: memref<1x128xf32, #tpu.memory_space<vmem>>, %arg8: memref<8x16xf32, #tpu.memory_space<vmem>>, %arg9: memref<128x128xbf16, #tpu.memory_space<vmem>>, %arg10: memref<1x128xf32, #tpu.memory_space<vmem>>, %arg11: memref<8x128xf32, #tpu.memory_space<vmem>>, %arg12: memref<8x128xf32, #tpu.memory_space<vmem>>, %arg13: memref<1x128xf32, #tpu.memory_space<vmem>>) attributes {dimension_semantics = [], scalar_prefetch = 0 : i64, scratch_operands = 0 : i64, tpu.core_type = #tpu.core_type<tc>} {
    %c0 = arith.constant 0 : index
    %c0_0 = arith.constant 0 : index
    %0 = vector.load %arg0[%c0, %c0_0] : memref<16x16xbf16, #tpu.memory_space<vmem>>, vector<16x16xbf16>
    %c0_1 = arith.constant 0 : index
    %c0_2 = arith.constant 0 : index
    %1 = vector.load %arg1[%c0_1, %c0_2] : memref<16x128xbf16, #tpu.memory_space<vmem>>, vector<16x128xbf16>
    %c0_3 = arith.constant 0 : index
    %c0_4 = arith.constant 0 : index
    %2 = vector.load %arg2[%c0_3, %c0_4] : memref<128x128xbf16, #tpu.memory_space<vmem>>, vector<128x128xbf16>
    %cst = arith.constant dense<0.000000e+00> : vector<16x128xf32>
    %3 = tpu.matmul %1, %2, %cst {dimension_numbers = #tpu.dot_dimension_numbers<[1], [0], [0], [1], [0, 0, 1, 1], [], []>} : vector<16x128xbf16>, vector<128x128xbf16>, vector<16x128xf32> -> vector<16x128xf32>
    %4 = arith.truncf %3 : vector<16x128xf32> to vector<16x128xbf16>
    %cst_5 = arith.constant dense<0.000000e+00> : vector<16x128xf32>
    %5 = tpu.matmul %0, %4, %cst_5 {dimension_numbers = #tpu.dot_dimension_numbers<[1], [0], [0], [1], [0, 0, 1, 1], [], []>} : vector<16x16xbf16>, vector<16x128xbf16>, vector<16x128xf32> -> vector<16x128xf32>
    %c0_6 = arith.constant 0 : index
    %c0_7 = arith.constant 0 : index
    %6 = vector.load %arg3[%c0_6, %c0_7] : memref<1x128xf32, #tpu.memory_space<vmem>>, vector<1x128xf32>
    %7 = vector.broadcast %6 : vector<1x128xf32> to vector<16x128xf32>
    %8 = arith.addf %5, %7 : vector<16x128xf32>
    %cst_8 = arith.constant 0.000000e+00 : f32
    %9 = vector.broadcast %cst_8 : f32 to vector<16x128xf32>
    %10 = arith.maximumf %8, %9 : vector<16x128xf32>
    %11 = arith.truncf %10 : vector<16x128xf32> to vector<16x128xbf16>
    %c0_9 = arith.constant 0 : index
    %c0_10 = arith.constant 0 : index
    %12 = vector.load %arg4[%c0_9, %c0_10] : memref<128x128xbf16, #tpu.memory_space<vmem>>, vector<128x128xbf16>
    %cst_11 = arith.constant dense<0.000000e+00> : vector<16x128xf32>
    %13 = tpu.matmul %11, %12, %cst_11 {dimension_numbers = #tpu.dot_dimension_numbers<[1], [0], [0], [1], [0, 0, 1, 1], [], []>} : vector<16x128xbf16>, vector<128x128xbf16>, vector<16x128xf32> -> vector<16x128xf32>
    %14 = arith.truncf %13 : vector<16x128xf32> to vector<16x128xbf16>
    %cst_12 = arith.constant dense<0.000000e+00> : vector<16x128xf32>
    %15 = tpu.matmul %0, %14, %cst_12 {dimension_numbers = #tpu.dot_dimension_numbers<[1], [0], [0], [1], [0, 0, 1, 1], [], []>} : vector<16x16xbf16>, vector<16x128xbf16>, vector<16x128xf32> -> vector<16x128xf32>
    %c0_13 = arith.constant 0 : index
    %c0_14 = arith.constant 0 : index
    %16 = vector.load %arg5[%c0_13, %c0_14] : memref<1x128xf32, #tpu.memory_space<vmem>>, vector<1x128xf32>
    %17 = vector.broadcast %16 : vector<1x128xf32> to vector<16x128xf32>
    %18 = arith.addf %15, %17 : vector<16x128xf32>
    %cst_15 = arith.constant 0.000000e+00 : f32
    %19 = vector.broadcast %cst_15 : f32 to vector<16x128xf32>
    %20 = arith.maximumf %18, %19 : vector<16x128xf32>
    %21 = arith.truncf %20 : vector<16x128xf32> to vector<16x128xbf16>
    %c0_16 = arith.constant 0 : index
    %c0_17 = arith.constant 0 : index
    %22 = vector.load %arg6[%c0_16, %c0_17] : memref<128x128xbf16, #tpu.memory_space<vmem>>, vector<128x128xbf16>
    %cst_18 = arith.constant dense<0.000000e+00> : vector<16x128xf32>
    %23 = tpu.matmul %21, %22, %cst_18 {dimension_numbers = #tpu.dot_dimension_numbers<[1], [0], [0], [1], [0, 0, 1, 1], [], []>} : vector<16x128xbf16>, vector<128x128xbf16>, vector<16x128xf32> -> vector<16x128xf32>
    %24 = arith.truncf %23 : vector<16x128xf32> to vector<16x128xbf16>
    %cst_19 = arith.constant dense<0.000000e+00> : vector<16x128xf32>
    %25 = tpu.matmul %0, %24, %cst_19 {dimension_numbers = #tpu.dot_dimension_numbers<[1], [0], [0], [1], [0, 0, 1, 1], [], []>} : vector<16x16xbf16>, vector<16x128xbf16>, vector<16x128xf32> -> vector<16x128xf32>
    %c0_20 = arith.constant 0 : index
    %c0_21 = arith.constant 0 : index
    %26 = vector.load %arg7[%c0_20, %c0_21] : memref<1x128xf32, #tpu.memory_space<vmem>>, vector<1x128xf32>
    %27 = vector.broadcast %26 : vector<1x128xf32> to vector<16x128xf32>
    %28 = arith.addf %25, %27 : vector<16x128xf32>
    %c0_22 = arith.constant 0 : index
    %c0_23 = arith.constant 0 : index
    %29 = vector.load %arg8[%c0_22, %c0_23] : memref<8x16xf32, #tpu.memory_space<vmem>>, vector<8x16xf32>
    %cst_24 = arith.constant dense<0.000000e+00> : vector<8x128xf32>
    %30 = tpu.matmul %29, %28, %cst_24 {dimension_numbers = #tpu.dot_dimension_numbers<[1], [0], [0], [1], [0, 0, 1, 1], [], []>} : vector<8x16xf32>, vector<16x128xf32>, vector<8x128xf32> -> vector<8x128xf32>
    %31 = arith.truncf %30 : vector<8x128xf32> to vector<8x128xbf16>
    %c0_25 = arith.constant 0 : index
    %c0_26 = arith.constant 0 : index
    %32 = vector.load %arg9[%c0_25, %c0_26] : memref<128x128xbf16, #tpu.memory_space<vmem>>, vector<128x128xbf16>
    %cst_27 = arith.constant dense<0.000000e+00> : vector<8x128xf32>
    %33 = tpu.matmul %31, %32, %cst_27 {dimension_numbers = #tpu.dot_dimension_numbers<[1], [0], [0], [1], [0, 0, 1, 1], [], []>} : vector<8x128xbf16>, vector<128x128xbf16>, vector<8x128xf32> -> vector<8x128xf32>
    %c0_28 = arith.constant 0 : index
    %c0_29 = arith.constant 0 : index
    %34 = vector.load %arg10[%c0_28, %c0_29] : memref<1x128xf32, #tpu.memory_space<vmem>>, vector<1x128xf32>
    %35 = vector.broadcast %34 : vector<1x128xf32> to vector<8x128xf32>
    %36 = arith.addf %33, %35 : vector<8x128xf32>
    %c0_30 = arith.constant 0 : index
    %c0_31 = arith.constant 0 : index
    %37 = vector.load %arg11[%c0_30, %c0_31] : memref<8x128xf32, #tpu.memory_space<vmem>>, vector<8x128xf32>
    %38 = tpu.iota {dimensions = array<i32: 0>} : vector<8x128xi32>
    %39 = tpu.iota {dimensions = array<i32: 1>} : vector<8x128xi32>
    %c2_i32 = arith.constant 2 : i32
    %40 = vector.broadcast %c2_i32 : i32 to vector<8x128xi32>
    %41 = arith.cmpi slt, %38, %40 : vector<8x128xi32>
    %c0_i32 = arith.constant 0 : i32
    %42 = vector.broadcast %c0_i32 : i32 to vector<8x128xi32>
    %43 = arith.cmpi eq, %39, %42 : vector<8x128xi32>
    %44 = arith.andi %41, %43 : vector<8x128xi1>
    %45 = arith.extui %44 : vector<8x128xi1> to vector<8x128xi32>
    %46 = arith.sitofp %45 : vector<8x128xi32> to vector<8x128xf32>
    %cst_32 = arith.constant 0.000000e+00 : f32
    %47 = vector.broadcast %cst_32 : f32 to vector<8x128xf32>
    %48 = arith.maximumf %36, %47 : vector<8x128xf32>
    %49 = arith.mulf %36, %37 : vector<8x128xf32>
    %50 = arith.subf %48, %49 : vector<8x128xf32>
    %51 = math.absf %36 : vector<8x128xf32>
    %cst_33 = arith.constant 0.000000e+00 : f32
    %52 = vector.broadcast %cst_33 : f32 to vector<8x128xf32>
    %53 = arith.subf %52, %51 : vector<8x128xf32>
    %54 = math.exp %53 : vector<8x128xf32>
    %cst_34 = arith.constant 1.000000e+00 : f32
    %55 = vector.broadcast %cst_34 : f32 to vector<8x128xf32>
    %56 = arith.addf %55, %54 : vector<8x128xf32>
    %57 = math.log %56 : vector<8x128xf32>
    %58 = arith.addf %50, %57 : vector<8x128xf32>
    %59 = arith.mulf %58, %46 : vector<8x128xf32>
    %cst_35 = arith.constant dense<0.000000e+00> : vector<128xf32>
    %60 = vector.multi_reduction <add>, %59, %cst_35 [0] : vector<8x128xf32> to vector<128xf32>
    %61 = vector.shape_cast %60 : vector<128xf32> to vector<1x128xf32>
    %cst_36 = arith.constant 5.000000e-01 : f32
    %62 = vector.broadcast %cst_36 : f32 to vector<1x128xf32>
    %63 = arith.mulf %61, %62 : vector<1x128xf32>
    %c0_37 = arith.constant 0 : index
    %c0_38 = arith.constant 0 : index
    %64 = vector.load %arg13[%c0_37, %c0_38] : memref<1x128xf32, #tpu.memory_space<vmem>>, vector<1x128xf32>
    tpu.vector_store %arg13[%c0_37, %c0_38], %63 {strides = array<i32>} : memref<1x128xf32, #tpu.memory_space<vmem>>, vector<1x128xf32>,
    %cst_39 = arith.constant 0.000000e+00 : f32
    %65 = vector.broadcast %cst_39 : f32 to vector<8x128xf32>
    %66 = arith.subf %65, %36 : vector<8x128xf32>
    %67 = math.exp %66 : vector<8x128xf32>
    %cst_40 = arith.constant 1.000000e+00 : f32
    %68 = vector.broadcast %cst_40 : f32 to vector<8x128xf32>
    %69 = arith.addf %68, %67 : vector<8x128xf32>
    %cst_41 = arith.constant 1.000000e+00 : f32
    %70 = vector.broadcast %cst_41 : f32 to vector<8x128xf32>
    %71 = arith.divf %70, %69 : vector<8x128xf32>
    %c0_42 = arith.constant 0 : index
    %c0_43 = arith.constant 0 : index
    %72 = vector.load %arg12[%c0_42, %c0_43] : memref<8x128xf32, #tpu.memory_space<vmem>>, vector<8x128xf32>
    tpu.vector_store %arg12[%c0_42, %c0_43], %71 {strides = array<i32>} : memref<8x128xf32, #tpu.memory_space<vmem>>, vector<8x128xf32>,
    return
  }
}

</mosaic_0001>

<bundles_post_ra>
// kernel: _lambda_.1
= control target key start
LH: loop header
LB: loop body
LE: loop exit
PB: predicated region body
PF: predicated region fallthrough
CT: control target
= control target key end

     0   :  { %v1033_v1 = vmov 0.0   ;;  %vm1034_vm0 = vmmov 0   ;;  %s1295_s0 = inlined_call_operand.vmem [shape: bf16[16,16], index: 0, kind: input, shape index: {}]   ;;  %s1296_s1 = inlined_call_operand.vmem [shape: bf16[16,128], index: 1, kind: input, shape index: {}]   ;;  %s1297_s2 = inlined_call_operand.vmem [shape: bf16[128,128], index: 2, kind: input, shape index: {}]   ;;  %s1298_s3 = inlined_call_operand.vmem [shape: f32[1,128], index: 3, kind: input, shape index: {}, may-alias: {3,5,7}]   ;;  %s1299_s4 = inlined_call_operand.vmem [shape: bf16[128,128], index: 4, kind: input, shape index: {}]   ;;  %s1300_s5 = inlined_call_operand.vmem [shape: f32[1,128], index: 5, kind: input, shape index: {}, may-alias: {3,5,7}]   ;;  %s1301_s6 = inlined_call_operand.vmem [shape: bf16[128,128], index: 6, kind: input, shape index: {}]   ;;  %s1302_s7 = inlined_call_operand.vmem [shape: f32[1,128], index: 7, kind: input, shape index: {}, may-alias: {3,5,7}]   ;;  %s1303_s8 = inlined_call_operand.vmem [shape: f32[8,16], index: 8, kind: input, shape index: {}]   ;;  %s1304_s9 = inlined_call_operand.vmem [shape: bf16[128,128], index: 9, kind: input, shape index: {}]   ;;  %s1305_s10 = inlined_call_operand.vmem [shape: f32[1,128], index: 10, kind: input, shape index: {}]   ;;  %s1306_s11 = inlined_call_operand.vmem [shape: f32[8,128], index: 11, kind: input, shape index: {}]   ;;  %s1307_s12 = inlined_call_operand.vmem [shape: f32[8,128], index: 12, kind: output, shape index: {0}]   ;;  %s1308_s13 = inlined_call_operand.hbm [shape: f32[1,128], index: 13, kind: output, shape index: {1}]  }
   0x1   :  { %v969_v0 = vld [vmem:[%s1297_s2 + $0x38] sm:$0xff]   ;;  %861 = vmatprep.subr.bf16.mxu0 %v1033_v1  ;;  %881 = vmatprep.subr.bf16.mxu1 %v1033_v1  ;;  %v970_v2 = vld [vmem:[%s1297_s2 + $0x30] sm:$0xff]   ;;  %v971_v3 = vld [vmem:[%s1297_s2 + $0x28] sm:$0xff]  }
   0x2   :  { %862 = vmatpush3.bf16.msra.mxu0 %v969_v0  ;;  %877 = vmatprep.mubr.msk.bf16.mxu0 %vm1034_vm0, %v1033_v1  ;;  %v972_v4 = vld [vmem:[%s1297_s2 + $0x20] sm:$0xff]   ;;  %v973_v5 = vld [vmem:[%s1297_s2 + $0x18] sm:$0xff]   ;;  %v974_v6 = vld [vmem:[%s1297_s2 + $0x10] sm:$0xff]  }
   0x3   :  { %863 = vmatprep.subr.bf16.mxu0 %v1033_v1  ;;  %883 = vmatprep.mubr.msk.bf16.mxu1 %vm1034_vm0, %v1033_v1  ;;  %v975_v7 = vld [vmem:[%s1297_s2 + $0x8] sm:$0xff]  }
   0x6   :  { %864 = vmatpush3.bf16.msra.mxu0 %v970_v2 }
   0x7   :  { %865 = vmatprep.subr.bf16.mxu0 %v1033_v1 }
   0xa   :  { %866 = vmatpush3.bf16.msra.mxu0 %v971_v3 }
   0xb   :  { %867 = vmatprep.subr.bf16.mxu0 %v1033_v1 }
   0xe   :  { %868 = vmatpush3.bf16.msra.mxu0 %v972_v4 }
   0xf   :  { %869 = vmatprep.subr.bf16.mxu0 %v1033_v1 }
  0x12   :  { %870 = vmatpush3.bf16.msra.mxu0 %v973_v5 }
  0x13   :  { %871 = vmatprep.subr.bf16.mxu0 %v1033_v1 }
  0x16   :  { %872 = vmatpush3.bf16.msra.mxu0 %v974_v6 }
  0x17   :  { %873 = vmatprep.subr.bf16.mxu0 %v1033_v1 }
  0x18   :  { %19 = vsyncpa [#allocation3], 0  ;;  %v976_v8 = vld [vmem:[%s1297_s2] sm:$0xff]   ;;  %vm173_vm1 = vcmask 130048   ;;  %v979_v16 = vld [vmem:[%s1299_s4 + $0x38] sm:$0xff]  }
  0x19   :  { %v977_v9 = vld [vmem:[%s1296_s1] sm:$0xff]   ;;  %v980_v17 = vld [vmem:[%s1299_s4 + $0x30] sm:$0xff]   ;;  %v981_v18 = vld [vmem:[%s1299_s4 + $0x28] sm:$0xff]  }
  0x1a   :  { %874 = vmatpush3.bf16.msra.mxu0 %v975_v7  ;;  %v1152_v15 = vld [vmem:[%s1295_s0] sm:$0xff]   ;;  %v983_v20 = vld [vmem:[%s1299_s4 + $0x18] sm:$0xff]   ;;  %v984_v21 = vld [vmem:[%s1299_s4 + $0x10] sm:$0xff]  }
  0x1b   :  { %875 = vmatprep.subr.bf16.mxu0 %v1033_v1  ;;  %v982_v19 = vld [vmem:[%s1299_s4 + $0x20] sm:$0xff]   ;;  %v985_v22 = vld [vmem:[%s1299_s4 + $0x8] sm:$0xff]   ;;  %v987_v39 = vld [vmem:[%s1301_s6 + $0x38] sm:$0xff]  }
  0x1c   :  { %v986_v23 = vld [vmem:[%s1299_s4] sm:$0xff]   ;;  %v988_v40 = vld [vmem:[%s1301_s6 + $0x30] sm:$0xff]   ;;  %v989_v41 = vld [vmem:[%s1301_s6 + $0x28] sm:$0xff]  }
  0x1d   :  { %v782_v24 = vld [vmem:[%s1298_s3] ss:$0 sm:$0xff]  ;;  %v991_v43 = vld [vmem:[%s1301_s6 + $0x18] sm:$0xff]   ;;  %v992_v44 = vld [vmem:[%s1301_s6 + $0x10] sm:$0xff]  }
  0x1e   :  { %876 = vmatpush3.bf16.msra.mxu0 %v976_v8  ;;  %v990_v42 = vld [vmem:[%s1301_s6 + $0x20] sm:$0xff]   ;;  %v993_v45 = vld [vmem:[%s1301_s6 + $0x8] sm:$0xff]   ;;  %v995_v7 = vld [vmem:[%s1304_s9 + $0x38] sm:$0xff]  }
  0x1f   :  { %933 = vmatprep.subr.bf16.mxu0 %v1033_v1  ;;  %v994_v46 = vld [vmem:[%s1301_s6] sm:$0xff]   ;;  %v996_v8 = vld [vmem:[%s1304_s9 + $0x30] sm:$0xff]  }
  0x20   :  { %v793_v47 = vld [vmem:[%s1300_s5] ss:$0 sm:$0xff] }
  0x21   :  { %878 = vmatmul.mubr.bf16.vlgmr.msra.gmra.mxu0 %v977_v9  ;;  %v803_v0 = vld [vmem:[%s1302_s7] ss:$0 sm:$0xff]  ;;  %v997_v9 = vld [vmem:[%s1304_s9 + $0x28] sm:$0xff]  }
  0x22   :  { %935 = vmatprep.mubr.msk.bf16.mxu0 %vm1034_vm0, %v1033_v1  ;;  %v532_v6 = vld [vmem:[%s1303_s8] sm:$0xff] }
  0xe1   :  { %v153_v10 = vpop.f32.mrf.mxu0 }
  0xe3   :  { %v879_v11 = vpop.f32.mrf.mxu0 }
  0xe4   :  { %v999_v11 = vld [vmem:[%s1304_s9 + $0x18] sm:$0xff]  }
  0xe5   :  { %v156_v12 = vpop.f32.mrf.mxu0 }
  0xe6   :  { %v160_v13 = vpack.c.bf16 %v156_v12, %v153_v10  ;;  %v998_v10 = vld [vmem:[%s1304_s9 + $0x20] sm:$0xff]   ;;  %v1000_v12 = vld [vmem:[%s1304_s9 + $0x10] sm:$0xff]  }
  0xe7   :  { %v880_v14 = vpop.f32.mrf.mxu0 }
  0xe8   :  { %882 = vmatpush3.bf16.msra.mxu1 %v160_v13  ;;  %v1001_v13 = vld [vmem:[%s1304_s9 + $0x8] sm:$0xff]   ;;  %v1002_v14 = vld [vmem:[%s1304_s9] sm:$0xff]  }
  0xe9   :  { %887 = vmatprep.subr.bf16.mxu1 %v1033_v1 }
  0xeb   :  { %884 = vmatmul.mubr.msk.bf16.vlgmr.msra.gmra.mxu1 %vm173_vm1, %v1152_v15 }
  0xec   :  { %888 = vmatpush3.bf16.msra.mxu1 %v979_v16  ;;  %903 = vmatprep.mubr.msk.bf16.mxu1 %vm1034_vm0, %v1033_v1 }
  0xed   :  { %889 = vmatprep.subr.bf16.mxu1 %v1033_v1 }
  0xf0   :  { %890 = vmatpush3.bf16.msra.mxu1 %v980_v17 }
  0xf1   :  { %891 = vmatprep.subr.bf16.mxu1 %v1033_v1 }
  0xf4   :  { %892 = vmatpush3.bf16.msra.mxu1 %v981_v18  ;;  %v806_v18 = vld [vmem:[%s1305_s10] ss:$0 sm:$0xff] }
  0xf5   :  { %893 = vmatprep.subr.bf16.mxu1 %v1033_v1 }
  0xf8   :  { %894 = vmatpush3.bf16.msra.mxu1 %v982_v19 }
  0xf9   :  { %895 = vmatprep.subr.bf16.mxu1 %v1033_v1 }
  0xfc   :  { %896 = vmatpush3.bf16.msra.mxu1 %v983_v20 }
  0xfd   :  { %897 = vmatprep.subr.bf16.mxu1 %v1033_v1 }
 0x100   :  { %898 = vmatpush3.bf16.msra.mxu1 %v984_v21 }
 0x101   :  { %899 = vmatprep.subr.bf16.mxu1 %v1033_v1 }
 0x104   :  { %900 = vmatpush3.bf16.msra.mxu1 %v985_v22 }
 0x105   :  { %901 = vmatprep.subr.bf16.mxu1 %v1033_v1 }
 0x108   :  { %902 = vmatpush3.bf16.msra.mxu1 %v986_v23 }
 0x109   :  { %907 = vmatprep.subr.bf16.mxu1 %v1033_v1 }
 0x1ab   :  { %v211_v25 = vpop.f32.mrf.mxu1 }
 0x1ac   :  { %v212_v27 = vadd.f32 %v782_v24, %v211_v25 }
 0x1ad   :  { %v885_v26 = vpop.f32.mrf.mxu1 }
 0x1ae   :  { %v218_v31 = vmax.f32 %v212_v27, 0.0 }
 0x1af   :  { %v214_v28 = vpop.f32.mrf.mxu1 }
 0x1b0   :  { %v215_v29 = vadd.f32 %v782_v24, %v214_v28 }
 0x1b1   :  { %v886_v30 = vpop.f32.mrf.mxu1 }
 0x1b2   :  { %v219_v32 = vmax.f32 %v215_v29, 0.0 }
 0x1b4   :  { %v220_v33 = vpack.c.bf16 %v219_v32, %v218_v31 }
 0x1b6   :  { %904 = vmatmul.mubr.bf16.vlgmr.msra.gmra.mxu1 %v220_v33  ;;  %v719_v33 = vlaneseq }
 0x1b7   :  { %909 = vmatprep.mubr.msk.bf16.mxu1 %vm1034_vm0, %v1033_v1 }
 0x276   :  { %v319_v34 = vpop.f32.mrf.mxu1 }
 0x278   :  { %v905_v35 = vpop.f32.mrf.mxu1 }
 0x279   :  { %v722_v35 = vand.u32 127, %v719_v33 }
 0x27a   :  { %v322_v36 = vpop.f32.mrf.mxu1 }
 0x27b   :  { %v326_v37 = vpack.c.bf16 %v322_v36, %v319_v34  ;;  %v720_v34 = vshrl.u32 %v719_v33, 7  ;;  %v718_v36 = vld [vmem:[%s1306_s11] sm:$0xff]  ;;  %vm724_vm3 = vcmp.eq.s32.totalorder %v722_v35, 0  ;;  %s1035_s11 = smov [#allocation2]  }
 0x27c   :  { %v906_v38 = vpop.f32.mrf.mxu1  ;;  %s763_s20 = sshll.u32 %s1035_s11, 4  ;;  %s764_s20 = int_to_ptr.vmem [resolvable:$true] %s763_s20 }
 0x27d   :  { %908 = vmatpush3.bf16.msra.mxu1 %v326_v37  ;;  %vm723_vm2 = vcmp.lt.s32.totalorder %v720_v34, 2  ;;  %s1015_s21 = scalar_lea.vmem %s764_s20, 32  ;;  %p1016_p1 = scmp.lt.s32.totalorder %s764_s20, %s764_s20 }
 0x27e   :  { %913 = vmatprep.subr.bf16.mxu1 %v1033_v1  ;;  %vm725_vm4 = vmand %vm723_vm2, %vm724_vm3 }
 0x280   :  { %910 = vmatmul.mubr.msk.bf16.vlgmr.msra.gmra.mxu1 %vm173_vm1, %v1152_v15 }
 0x281   :  { %914 = vmatpush3.bf16.msra.mxu1 %v987_v39  ;;  %929 = vmatprep.mubr.msk.bf16.mxu1 %vm1034_vm0, %v1033_v1 }
 0x282   :  { %915 = vmatprep.subr.bf16.mxu1 %v1033_v1 }
 0x285   :  { %916 = vmatpush3.bf16.msra.mxu1 %v988_v40 }
 0x286   :  { %917 = vmatprep.subr.bf16.mxu1 %v1033_v1 }
 0x289   :  { %918 = vmatpush3.bf16.msra.mxu1 %v989_v41 }
 0x28a   :  { %919 = vmatprep.subr.bf16.mxu1 %v1033_v1 }
 0x28d   :  { %920 = vmatpush3.bf16.msra.mxu1 %v990_v42 }
 0x28e   :  { %921 = vmatprep.subr.bf16.mxu1 %v1033_v1 }
 0x291   :  { %922 = vmatpush3.bf16.msra.mxu1 %v991_v43  ;;  %v815_v43 = vsel %vm725_vm4, 1.0, %v1033_v1 }
 0x292   :  { %923 = vmatprep.subr.bf16.mxu1 %v1033_v1 }
 0x295   :  { %924 = vmatpush3.bf16.msra.mxu1 %v992_v44 }
 0x296   :  { %925 = vmatprep.subr.bf16.mxu1 %v1033_v1 }
 0x299   :  { %926 = vmatpush3.bf16.msra.mxu1 %v993_v45 }
 0x29a   :  { %927 = vmatprep.subr.bf16.mxu1 %v1033_v1 }
 0x29d   :  { %928 = vmatpush3.bf16.msra.mxu1 %v994_v46 }
 0x340   :  { %v368_v48 = vpop.f32.mrf.mxu1 }
 0x341   :  { %v369_v50 = vadd.f32 %v793_v47, %v368_v48 }
 0x342   :  { %v911_v49 = vpop.f32.mrf.mxu1 }
 0x343   :  { %v375_v54 = vmax.f32 %v369_v50, 0.0 }
 0x344   :  { %v371_v51 = vpop.f32.mrf.mxu1 }
 0x345   :  { %v372_v52 = vadd.f32 %v793_v47, %v371_v51 }
 0x346   :  { %v912_v53 = vpop.f32.mrf.mxu1 }
 0x347   :  { %v376_v55 = vmax.f32 %v372_v52, 0.0 }
 0x349   :  { %v377_v56 = vpack.c.bf16 %v376_v55, %v375_v54 }
 0x34b   :  { %930 = vmatmul.mubr.bf16.vlgmr.msra.gmra.mxu1 %v377_v56 }
 0x40b   :  { %v476_v57 = vpop.f32.mrf.mxu1 }
 0x40d   :  { %v931_v58 = vpop.f32.mrf.mxu1 }
 0x40f   :  { %v479_v59 = vpop.f32.mrf.mxu1 }
 0x410   :  { %v483_v60 = vpack.c.bf16 %v479_v59, %v476_v57 }
 0x411   :  { %v932_v61 = vpop.f32.mrf.mxu1 }
 0x412   :  { %934 = vmatpush3.bf16.msra.mxu0 %v483_v60 }
 0x413   :  { %939 = vmatprep.subr.mxu0 %v1033_v1 }
 0x415   :  { %936 = vmatmul.mubr.msk.bf16.vlgmr.msra.gmra.mxu0 %vm173_vm1, %v1152_v15 }
 0x416   :  { %943 = vmatprep.mubr.msk.f32.mxu0 %vm1034_vm0, %v1033_v1 }
 0x4d5   :  { %v525_v62 = vpop.f32.mrf.mxu0 }
 0x4d6   :  { %v526_v5 = vadd.f32 %v803_v0, %v525_v62 }
 0x4d7   :  { %v937_v63 = vpop.f32.mrf.mxu0 }
 0x4d9   :  { %v528_v2 = vpop.f32.mrf.mxu0 }
 0x4da   :  { %v529_v3 = vadd.f32 %v803_v0, %v528_v2 }
 0x4db   :  { %v938_v4 = vpop.f32.mrf.mxu0 }
 0x4dc   :  { %940 = vmatpush3.msra.mxu0 %v529_v3 }
 0x4dd   :  { %941 = vmatprep.subr.mxu0 %v1033_v1 }
 0x4de   :  { %942 = vmatpush3.msra.mxu0 %v526_v5 }
 0x4df   :  { %944 = vmatmul.mubr.msk.f32.vlgmr.msra.gmra.mxu0 %vm173_vm1, %v532_v6  ;;  %946 = vmatprep.subr.bf16.mxu0 %v1033_v1 }
 0x4e0   :  { %947 = vmatpush3.bf16.msra.mxu0 %v995_v7  ;;  %962 = vmatprep.mubr.msk.bf16.mxu0 %vm1034_vm0, %v1033_v1 }
 0x4e1   :  { %948 = vmatprep.subr.bf16.mxu0 %v1033_v1 }
 0x4e4   :  { %949 = vmatpush3.bf16.msra.mxu0 %v996_v8 }
 0x4e5   :  { %950 = vmatprep.subr.bf16.mxu0 %v1033_v1 }
 0x4e8   :  { %951 = vmatpush3.bf16.msra.mxu0 %v997_v9 }
 0x4e9   :  { %952 = vmatprep.subr.bf16.mxu0 %v1033_v1 }
 0x4ec   :  { %953 = vmatpush3.bf16.msra.mxu0 %v998_v10 }
 0x4ed   :  { %954 = vmatprep.subr.bf16.mxu0 %v1033_v1 }
 0x4f0   :  { %955 = vmatpush3.bf16.msra.mxu0 %v999_v11 }
 0x4f1   :  { %956 = vmatprep.subr.bf16.mxu0 %v1033_v1 }
 0x4f4   :  { %957 = vmatpush3.bf16.msra.mxu0 %v1000_v12 }
 0x4f5   :  { %958 = vmatprep.subr.bf16.mxu0 %v1033_v1 }
 0x4f8   :  { %959 = vmatpush3.bf16.msra.mxu0 %v1001_v13 }
 0x4f9   :  { %960 = vmatprep.subr.bf16.mxu0 %v1033_v1 }
 0x4fc   :  { %961 = vmatpush3.bf16.msra.mxu0 %v1002_v14 }
 0x59f   :  { %v602_v15 = vpop.f32.mrf.mxu0 }
 0x5a0   :  { %v606_v16 = vpack.c.bf16 %v602_v15, %v602_v15 }
 0x5a1   :  { %v945_v17 = vpop.f32.mrf.mxu0 }
 0x5a2   :  { %963 = vmatmul.mubr.bf16.vlgmr.msra.gmra.mxu0 %v606_v16 }
 0x662   :  { %v712_v19 = vpop.f32.mrf.mxu0 }
 0x663   :  { %v713_v20 = vadd.f32 %v806_v18, %v712_v19 }
 0x664   :  { %v964_v21 = vpop.f32.mrf.mxu0 }
 0x665   :  { %v731_v22 = vand.u32 2147483647, %v713_v20  ;;  %v748_v23 = vsub.f32 0.0, %v713_v20  ;;  %v728_v37 = vmax.f32 %v713_v20, 0.0  ;;  %v729_v38 = vmul.f32 %v718_v36, %v713_v20 }
 0x666   :  { %v715_v24 = vpop.f32.mrf.mxu0 }
 0x667   :  { %v732_v25 = vsub.f32 0.0, %v731_v22  ;;  %v749_v26 = vmul.f32 1.442695, %v748_v23  ;;  %v730_v41 = vsub.f32 %v728_v37, %v729_v38 }
 0x668   :  { %v965_v27 = vpop.f32.mrf.mxu0 }
 0x669   :  { %v733_v28 = vmul.f32 1.442695, %v732_v25  ;;  %1003 = vpow2.f32 %v749_v26 }
 0x66b   :  { %1005 = vpow2.f32 %v733_v28 }
 0x676   :  { %v1004_v29 = vpop.eup %1003 }
 0x677   :  { %v751_v30 = vadd.f32 1.0, %v1004_v29 }
 0x678   :  { %v1006_v31 = vpop.eup %1005 }
 0x679   :  { %v735_v32 = vadd.f32 1.0, %v1006_v31  ;;  %1007 = vrcp.f32 %v751_v30 }
 0x67b   :  { %1009 = vlog2.f32 %v735_v32 }
 0x686   :  { %v1008_v39 = vpop.eup %1007 }
 0x687   :  { %754 = vst [vmem:[%s1307_s12] sm:$0xff] %v1008_v39  ;;  %s1011_s12 = scalar_lea.vmem %s764_s20, 16 }
 0x688   :  { %v1010_v40 = vpop.eup %1009  ;;  %p1012_p0 = scmp.ne.s32.totalorder %s764_s20, %s1011_s12  ;;  %p1017_p2 = scmp.lt.s32.totalorder %s1015_s21, %s1011_s12 }
 0x689   :  { %v737_v42 = vmul.f32 0.6931472, %v1010_v40 }
 0x68a   :  { %p1018_p3 = por %p1017_p2, %p1016_p1 }
 0x68b   :  { %v738_v44 = vadd.f32 %v737_v42, %v730_v41 }
 0x68c   :  { %p1019_p4 = pnand %p1018_p3, %p1012_p0 }
 0x68d   :  { %v739_v45 = vmul.f32 %v815_v43, %v738_v44 }
 0x68f   :  { %v740_v46 = vrot.slane %v739_v45, 4 }
 0x691   :  { %v741_v47 = vadd.f32 %v740_v46, %v739_v45 }
 0x693   :  { %v742_v48 = vrot.slane %v741_v47, 2 }
 0x695   :  { %v743_v49 = vadd.f32 %v742_v48, %v741_v47 }
 0x697   :  { %v744_v50 = vrot.slane %v743_v49, 1 }
 0x699   :  { %v745_v51 = vadd.f32 %v744_v50, %v743_v49 }
 0x69b   :  { %v746_v52 = vmul.f32 0.5, %v745_v51 }
 0x69d   :  { %747 = vst [vmem:[#allocation2] sm:$0x1] %v746_v52 }
 0x69e   :  { %1022 = shalt.err (!%p1019_p4)
}
 0x69f   :  { %766 = dma.vmem_to_hbm [thread:$0]  %s764_s20, 16, %s1308_s13, [#allocation3]  }
 0x6a0   :  { %1031 = dma.done.wait [#allocation3], 16  }
 0x6a1   :  { %1032 = vsyncadd [#allocation3], 4294967280 }
 0x6a2   :  { %772 = vsyncpa [#allocation3], 1 }

</bundles_post_ra>
